<compile_context>
chip_gen: v7x
topology: tpu7x:2x2x1
jax: 0.10.0
libtpu: 0.0.40
codegen_flags: <defaults>
</compile_context>

<pallas_src>
import functools

import jax
import jax.numpy as jnp
from jax.experimental import pallas as pl
from jax.experimental.pallas import tpu as pltpu


def _round_up(v, m):
    return ((v + m - 1) // m) * m


def _cdiv(a, b):
    return -(-a // b)


def _vmem_capacity_bytes():
    try:
        return int(pltpu.get_tpu_info().vmem_capacity_bytes)
    except Exception:
        return 64 * 1024 * 1024          # conservative (v7x-sized) default


# --------------------------------------------------------------------------- #
# Kernel
# --------------------------------------------------------------------------- #
def _highway_fused_kernel(x_ref, w_ref, b_ref, o_ref, act_ref, *,
                          f_pad, weights_resident):
    layer = pl.program_id(1)
    last = pl.num_programs(1) - 1

    # First layer for this row tile: load the activation into the f32 scratch.
    @pl.when(layer == 0)
    def _():
        act_ref[...] = x_ref[...].astype(jnp.float32)

    cur = act_ref[...]                                     # (tile_n, F_pad) f32
    w = w_ref[layer] if weights_resident else w_ref[0]     # (F_pad, 2*F_pad)
    b = (b_ref[layer] if weights_resident else b_ref[0]).astype(jnp.float32)

    # One fused MXU matmul produces both the transform and the gate halves.
    y = jnp.dot(cur.astype(w.dtype), w,
                preferred_element_type=jnp.float32) + b    # (tile_n, 2*F_pad)

    h = jnp.maximum(y[:, :f_pad], 0.0)                     # relu branch
    g = jax.nn.sigmoid(y[:, f_pad:])                       # gate branch (EUP)

    # gate * cur + (1 - gate) * h  ==  h + g * (cur - h)
    new = h + g * (cur - h)

    @pl.when(layer < last)          # last layer only needs the o_ref write
    def _():
        act_ref[...] = new

    @pl.when(layer == last)
    def _():
        o_ref[...] = new.astype(o_ref.dtype)


# --------------------------------------------------------------------------- #
# VMEM-budget-driven planning
# --------------------------------------------------------------------------- #
def _plan_tiling(f_pad, num_layers, x_bytes, w_bytes, b_bytes, capacity):
    """Pick (tile_n, weights_resident) so everything fits ~60% of VMEM."""
    budget = int(0.6 * capacity)
    per_layer_w = f_pad * 2 * f_pad * w_bytes + 2 * f_pad * b_bytes
    resident_w = num_layers * per_layer_w
    streamed_w = 2 * per_layer_w                    # double-buffered one layer

    def act_bytes(t):
        return (2 * t * f_pad * x_bytes             # input tile  (x2 buffers)
                + 2 * t * f_pad * x_bytes           # output tile (x2 buffers)
                + t * f_pad * 4                     # f32 activation scratch
                + t * 2 * f_pad * 4)                # matmul-result slab headroom

    max_tile = 1024 if capacity >= (96 << 20) else 512   # bigger tiles on v5e/v6e
    candidates = [t for t in (1024, 512, 256, 128, 64, 32, 16, 8) if t <= max_tile]

    for resident in (True, False):
        w_total = resident_w if resident else streamed_w
        for t in candidates:
            if act_bytes(t) + w_total <= budget:
                return t, resident
    return 8, False


# --------------------------------------------------------------------------- #
# pallas_call wrapper
# --------------------------------------------------------------------------- #
def _run_pallas(*, x_in, w_stack, b_stack, tile_n, f_pad, num_layers,
                weights_resident, alias_input, vmem_limit,
                single_buffer_weights):
    n_pad = x_in.shape[0]
    grid = (n_pad // tile_n, num_layers)

    if weights_resident:
        kw = {"pipeline_mode": pl.Buffered(1)} if single_buffer_weights else {}
        w_spec = pl.BlockSpec((num_layers, f_pad, 2 * f_pad),
                              lambda i, l: (0, 0, 0), **kw)
        b_spec = pl.BlockSpec((num_layers, 1, 2 * f_pad),
                              lambda i, l: (0, 0, 0), **kw)
    else:
        w_spec = pl.BlockSpec((1, f_pad, 2 * f_pad), lambda i, l: (l, 0, 0))
        b_spec = pl.BlockSpec((1, 1, 2 * f_pad), lambda i, l: (l, 0, 0))

    return pl.pallas_call(
        functools.partial(_highway_fused_kernel, f_pad=f_pad,
                          weights_resident=weights_resident),
        out_shape=jax.ShapeDtypeStruct((n_pad, f_pad), x_in.dtype),
        grid_spec=pltpu.PrefetchScalarGridSpec(
            num_scalar_prefetch=0,
            grid=grid,
            in_specs=[
                pl.BlockSpec((tile_n, f_pad), lambda i, l: (i, 0)),   # x rows
                w_spec,                                               # W stack
                b_spec,                                               # b stack
            ],
            out_specs=pl.BlockSpec((tile_n, f_pad), lambda i, l: (i, 0)),
            scratch_shapes=[pltpu.VMEM((tile_n, f_pad), jnp.float32)],
        ),
        compiler_params=pltpu.CompilerParams(
            dimension_semantics=("parallel", "arbitrary"),
            vmem_limit_bytes=vmem_limit),
        input_output_aliases=({0: 0} if alias_input else {}),
    )(x_in, w_stack, b_stack)


def highway_forward(x, params, *, matmul_dtype=jnp.bfloat16):
    """x: (..., F).  params: list of (w, b) per layer with w: (F, 2F) laid out
    as [h | gate] columns (i.e. torch layer.weight.T) and b: (2F,)."""
    if not params:
        return x

    orig_shape = x.shape
    f = orig_shape[-1]
    x2d = x.reshape(-1, f)
    n = x2d.shape[0]
    num_layers = len(params)

    # Lane-dense feature padding (multiple of 128) -> [h | gate] split lands
    # on a lane-tile boundary.
    f_pad = _round_up(max(f, 128), 128)

    capacity = _vmem_capacity_bytes()
    x_bytes = jnp.dtype(x.dtype).itemsize
    w_bytes = jnp.dtype(matmul_dtype).itemsize
    tile_plan, weights_resident = _plan_tiling(
        f_pad, num_layers, x_bytes, w_bytes, 4, capacity)

    tile_n = min(tile_plan, _round_up(n, 8))
    # Guarantee >= 2 row tiles when there is enough work so the "parallel"
    # row axis spans both v7x TensorCores (harmless on v5e/v6e).
    if n > 8 and _cdiv(n, tile_n) < 2:
        tile_n = _round_up(_cdiv(n, 2), 8)
    n_pad = _round_up(n, tile_n)

    vmem_limit = max(32 << 20, min(int(0.8 * capacity), 112 << 20))

    # Stack + pad parameters: (L, F_pad, 2*F_pad) bf16 and (L, 1, 2*F_pad) f32.
    # Padded feature columns stay exactly zero through every layer
    # (zero weight columns + zero bias -> h = 0, gate = 0.5, new = 0).
    w_list, b_list = [], []
    for (w, b) in params:
        w_p = jnp.zeros((f_pad, 2 * f_pad), dtype=w.dtype)
        w_p = w_p.at[:f, :f].set(w[:, :f])
        w_p = w_p.at[:f, f_pad:f_pad + f].set(w[:, f:])
        b_p = jnp.zeros((2 * f_pad,), dtype=jnp.float32)
        b_p = b_p.at[:f].set(b[:f].astype(jnp.float32))
        b_p = b_p.at[f_pad:f_pad + f].set(b[f:].astype(jnp.float32))
        w_list.append(w_p)
        b_list.append(b_p.reshape(1, 2 * f_pad))
    w_stack = jnp.stack(w_list, axis=0).astype(matmul_dtype)
    b_stack = jnp.stack(b_list, axis=0)

    # No-padding fast path for aligned shapes: skip the pad copy and the
    # output slice (each is a full activation HBM round trip).
    needs_pad = (f_pad != f) or (n_pad != n)
    if needs_pad:
        x_in = jnp.zeros((n_pad, f_pad), dtype=x.dtype)
        x_in = x_in.at[:n, :f].set(x2d)
    else:
        x_in = x2d

    run = functools.partial(
        _run_pallas, x_in=x_in, w_stack=w_stack, b_stack=b_stack,
        tile_n=tile_n, f_pad=f_pad, num_layers=num_layers,
        weights_resident=weights_resident,
        alias_input=needs_pad,      # only donate the internally-built pad buffer
        vmem_limit=vmem_limit)

    if weights_resident and hasattr(pl, "Buffered"):
        try:
            out_pad = run(single_buffer_weights=True)
        except Exception:
            # pipeline_mode not supported in this jax build -> default buffering
            out_pad = run(single_buffer_weights=False)
    else:
        out_pad = run(single_buffer_weights=False)

    if needs_pad:
        out_pad = out_pad[:n, :f]
    return out_pad.reshape(orig_shape)


# --------------------------------------------------------------------------- #
# Init + reference (mirror the torch module)
# --------------------------------------------------------------------------- #
def init_highway_params(key, in_features, num_layers, dtype=jnp.float32):
    """Deterministic synthetic init mirroring the torch module: each layer is
    Linear(F, 2F); the gate half of the bias is set to 1.0.
    Returns list of (w: (F, 2F) laid out as [h | gate], b: (2F,))."""
    # TODO(synk): repo-specific initialization.init_linear replaced by a
    # deterministic uniform init; gate-bias = 1.0 is preserved.
    params = []
    for i in range(num_layers):
        k = jax.random.fold_in(key, i)
        k_w, k_b = jax.random.split(k)
        bound = 1.0 / jnp.sqrt(in_features)
        # torch Linear weight is (2F, F) applied as x @ W.T; store transposed.
        w = jax.random.uniform(k_w, (in_features, 2 * in_features),
                               minval=-bound, maxval=bound, dtype=dtype)
        b = jax.random.uniform(k_b, (2 * in_features,),
                               minval=-bound, maxval=bound, dtype=dtype)
        b = b.at[in_features:].set(1.0)                   # gate bias = 1.0
        params.append((w, b))
    return params


def highway_reference(x, params):
    """Pure-JAX reference (mirrors the torch forward exactly)."""
    f = x.shape[-1]
    cur = x
    for (w, b) in params:
        y = cur @ w + b
        h = jax.nn.relu(y[..., :f])
        g = jax.nn.sigmoid(y[..., f:])
        cur = g * cur + (1.0 - g) * h
    return cur


if __name__ == "__main__":
    key = jax.random.PRNGKey(0)
    in_features = 32
    num_layers = 2
    batch, seq = 2, 8

    k_x, k_p = jax.random.split(key)
    x = jax.random.normal(k_x, (batch, seq, in_features), dtype=jnp.float32)
    params = init_highway_params(k_p, in_features, num_layers)

    ref = highway_reference(x, params)

    # Default path: bf16 matmul with f32 accumulation (native MXU rate).
    out_bf16 = jax.block_until_ready(highway_forward(x, params))
    assert out_bf16.shape == x.shape
    assert jnp.allclose(out_bf16, ref, atol=3e-2, rtol=3e-2), \
        "bf16-matmul kernel mismatch vs reference"

    # f32 matmul path: tight numerical check against the reference.
    out_f32 = jax.block_until_ready(
        highway_forward(x, params, matmul_dtype=jnp.float32))
    assert jnp.allclose(out_f32, ref, atol=2e-5, rtol=2e-5), \
        "f32-matmul kernel mismatch vs reference"

    print("KERNEL_OK")
</pallas_src>

<mosaic_0001>
module attributes {stable_mosaic.version = 11 : i64} {
  func.func @_highway_fused_kernel(%arg0: i32, %arg1: i32, %arg2: memref<8x128xf32, #tpu.memory_space<vmem>>, %arg3: memref<2x128x256xbf16, #tpu.memory_space<vmem>>, %arg4: memref<2x1x256xf32, #tpu.memory_space<vmem>>, %arg5: memref<8x128xf32, #tpu.memory_space<vmem>>, %arg6: memref<8x128xf32, #tpu.memory_space<vmem>>) attributes {dimension_semantics = [#tpu.dimension_semantics<parallel>, #tpu.dimension_semantics<arbitrary>], iteration_bounds = array<i64: 2, 2>, scalar_prefetch = 0 : i64, scratch_operands = 1 : i64, tpu.core_type = #tpu.core_type<tc>, window_params = [{transform_indices = @transform_0, window_bounds = array<i64: 8, 128>}, {pipeline_mode = #tpu.pipeline_mode<synchronous>, transform_indices = @transform_1, window_bounds = array<i64: 2, 128, 256>}, {pipeline_mode = #tpu.pipeline_mode<synchronous>, transform_indices = @transform_2, window_bounds = array<i64: 2, 1, 256>}, {transform_indices = @transform_3, window_bounds = array<i64: 8, 128>}]} {
    %c0_i32 = arith.constant 0 : i32
    %0 = arith.cmpi eq, %arg1, %c0_i32 : i32
    %1 = arith.extui %0 : i1 to i32
    %c0_i32_0 = arith.constant 0 : i32
    %2 = arith.cmpi ne, %1, %c0_i32_0 : i32
    scf.if %2 {
      %c0_11 = arith.constant 0 : index
      %c0_12 = arith.constant 0 : index
      %32 = vector.load %arg2[%c0_11, %c0_12] : memref<8x128xf32, #tpu.memory_space<vmem>>, vector<8x128xf32>
      %c0_13 = arith.constant 0 : index
      %c0_14 = arith.constant 0 : index
      %33 = vector.load %arg6[%c0_13, %c0_14] : memref<8x128xf32, #tpu.memory_space<vmem>>, vector<8x128xf32>
      tpu.vector_store %arg6[%c0_13, %c0_14], %32 {strides = array<i32>} : memref<8x128xf32, #tpu.memory_space<vmem>>, vector<8x128xf32>,
    } else {
    }
    %c0 = arith.constant 0 : index
    %c0_1 = arith.constant 0 : index
    %3 = vector.load %arg6[%c0, %c0_1] : memref<8x128xf32, #tpu.memory_space<vmem>>, vector<8x128xf32>
    %4 = arith.index_cast %arg1 : i32 to index
    %c0_2 = arith.constant 0 : index
    %c0_3 = arith.constant 0 : index
    %5 = vector.load %arg3[%4, %c0_2, %c0_3] : memref<2x128x256xbf16, #tpu.memory_space<vmem>>, vector<1x128x256xbf16>
    %6 = vector.shape_cast %5 : vector<1x128x256xbf16> to vector<128x256xbf16>
    %7 = arith.index_cast %arg1 : i32 to index
    %c0_4 = arith.constant 0 : index
    %c0_5 = arith.constant 0 : index
    %8 = vector.load %arg4[%7, %c0_4, %c0_5] : memref<2x1x256xf32, #tpu.memory_space<vmem>>, vector<1x1x256xf32>
    %9 = vector.shape_cast %8 : vector<1x1x256xf32> to vector<1x256xf32>
    %10 = arith.truncf %3 : vector<8x128xf32> to vector<8x128xbf16>
    %cst = arith.constant dense<0.000000e+00> : vector<8x256xf32>
    %11 = tpu.matmul %10, %6, %cst {dimension_numbers = #tpu.dot_dimension_numbers<[1], [0], [0], [1], [0, 0, 1, 1], [], []>} : vector<8x128xbf16>, vector<128x256xbf16>, vector<8x256xf32> -> vector<8x256xf32>
    %12 = vector.broadcast %9 : vector<1x256xf32> to vector<8x256xf32>
    %13 = arith.addf %11, %12 : vector<8x256xf32>
    %14 = vector.extract_strided_slice %13 {offsets = [0, 0], sizes = [8, 128], strides = [1, 1]} : vector<8x256xf32> to vector<8x128xf32>
    %cst_6 = arith.constant 0.000000e+00 : f32
    %15 = vector.broadcast %cst_6 : f32 to vector<8x128xf32>
    %16 = arith.maximumf %14, %15 : vector<8x128xf32>
    %17 = vector.extract_strided_slice %13 {offsets = [0, 128], sizes = [8, 128], strides = [1, 1]} : vector<8x256xf32> to vector<8x128xf32>
    %18 = arith.negf %17 : vector<8x128xf32>
    %19 = math.exp %18 : vector<8x128xf32>
    %cst_7 = arith.constant 1.000000e+00 : f32
    %20 = vector.broadcast %cst_7 : f32 to vector<8x128xf32>
    %21 = arith.addf %20, %19 : vector<8x128xf32>
    %22 = arith.divf %20, %21 : vector<8x128xf32>
    %23 = arith.subf %3, %16 : vector<8x128xf32>
    %24 = arith.mulf %22, %23 : vector<8x128xf32>
    %25 = arith.addf %16, %24 : vector<8x128xf32>
    %c1_i32 = arith.constant 1 : i32
    %26 = arith.cmpi slt, %arg1, %c1_i32 : i32
    %27 = arith.extui %26 : i1 to i32
    %c0_i32_8 = arith.constant 0 : i32
    %28 = arith.cmpi ne, %27, %c0_i32_8 : i32
    scf.if %28 {
      %c0_11 = arith.constant 0 : index
      %c0_12 = arith.constant 0 : index
      %32 = vector.load %arg6[%c0_11, %c0_12] : memref<8x128xf32, #tpu.memory_space<vmem>>, vector<8x128xf32>
      tpu.vector_store %arg6[%c0_11, %c0_12], %25 {strides = array<i32>} : memref<8x128xf32, #tpu.memory_space<vmem>>, vector<8x128xf32>,
    } else {
    }
    %c1_i32_9 = arith.constant 1 : i32
    %29 = arith.cmpi eq, %arg1, %c1_i32_9 : i32
    %30 = arith.extui %29 : i1 to i32
    %c0_i32_10 = arith.constant 0 : i32
    %31 = arith.cmpi ne, %30, %c0_i32_10 : i32
    scf.if %31 {
      %c0_11 = arith.constant 0 : index
      %c0_12 = arith.constant 0 : index
      %32 = vector.load %arg5[%c0_11, %c0_12] : memref<8x128xf32, #tpu.memory_space<vmem>>, vector<8x128xf32>
      tpu.vector_store %arg5[%c0_11, %c0_12], %25 {strides = array<i32>} : memref<8x128xf32, #tpu.memory_space<vmem>>, vector<8x128xf32>,
    } else {
    }
    return
  }
  func.func @transform_0(%arg0: i32, %arg1: i32) -> (i32, i32) {
    %c0_i32 = arith.constant 0 : i32
    %c0_i32_0 = arith.constant 0 : i32
    return %arg0, %c0_i32 : i32, i32
  }
  func.func @transform_1(%arg0: i32, %arg1: i32) -> (i32, i32, i32) {
    %c0_i32 = arith.constant 0 : i32
    %c0_i32_0 = arith.constant 0 : i32
    %c0_i32_1 = arith.constant 0 : i32
    %c0_i32_2 = arith.constant 0 : i32
    return %c0_i32, %c0_i32_0, %c0_i32_1 : i32, i32, i32
  }
  func.func @transform_2(%arg0: i32, %arg1: i32) -> (i32, i32, i32) {
    %c0_i32 = arith.constant 0 : i32
    %c0_i32_0 = arith.constant 0 : i32
    %c0_i32_1 = arith.constant 0 : i32
    %c0_i32_2 = arith.constant 0 : i32
    return %c0_i32, %c0_i32_0, %c0_i32_1 : i32, i32, i32
  }
  func.func @transform_3(%arg0: i32, %arg1: i32) -> (i32, i32) {
    %c0_i32 = arith.constant 0 : i32
    %c0_i32_0 = arith.constant 0 : i32
    return %arg0, %c0_i32 : i32, i32
  }
}

module attributes {stable_mosaic.version = 11 : i64} {
  func.func @_highway_fused_kernel(%arg0: i32, %arg1: i32, %arg2: memref<8x128xf32, #tpu.memory_space<vmem>>, %arg3: memref<2x128x256xbf16, #tpu.memory_space<vmem>>, %arg4: memref<2x1x256xf32, #tpu.memory_space<vmem>>, %arg5: memref<8x128xf32, #tpu.memory_space<vmem>>, %arg6: memref<8x128xf32, #tpu.memory_space<vmem>>) attributes {dimension_semantics = [#tpu.dimension_semantics<parallel>, #tpu.dimension_semantics<arbitrary>], iteration_bounds = array<i64: 2, 2>, scalar_prefetch = 0 : i64, scratch_operands = 1 : i64, tpu.core_type = #tpu.core_type<tc>, window_params = [{transform_indices = @transform_0, window_bounds = array<i64: 8, 128>}, {pipeline_mode = #tpu.pipeline_mode<synchronous>, transform_indices = @transform_1, window_bounds = array<i64: 2, 128, 256>}, {pipeline_mode = #tpu.pipeline_mode<synchronous>, transform_indices = @transform_2, window_bounds = array<i64: 2, 1, 256>}, {transform_indices = @transform_3, window_bounds = array<i64: 8, 128>}]} {
    %c0_i32 = arith.constant 0 : i32
    %0 = arith.cmpi eq, %arg1, %c0_i32 : i32
    %1 = arith.extui %0 : i1 to i32
    %c0_i32_0 = arith.constant 0 : i32
    %2 = arith.cmpi ne, %1, %c0_i32_0 : i32
    scf.if %2 {
      %c0_11 = arith.constant 0 : index
      %c0_12 = arith.constant 0 : index
      %32 = vector.load %arg2[%c0_11, %c0_12] : memref<8x128xf32, #tpu.memory_space<vmem>>, vector<8x128xf32>
      %c0_13 = arith.constant 0 : index
      %c0_14 = arith.constant 0 : index
      %33 = vector.load %arg6[%c0_13, %c0_14] : memref<8x128xf32, #tpu.memory_space<vmem>>, vector<8x128xf32>
      tpu.vector_store %arg6[%c0_13, %c0_14], %32 {strides = array<i32>} : memref<8x128xf32, #tpu.memory_space<vmem>>, vector<8x128xf32>,
    } else {
    }
    %c0 = arith.constant 0 : index
    %c0_1 = arith.constant 0 : index
    %3 = vector.load %arg6[%c0, %c0_1] : memref<8x128xf32, #tpu.memory_space<vmem>>, vector<8x128xf32>
    %4 = arith.index_cast %arg1 : i32 to index
    %c0_2 = arith.constant 0 : index
    %c0_3 = arith.constant 0 : index
    %5 = vector.load %arg3[%4, %c0_2, %c0_3] : memref<2x128x256xbf16, #tpu.memory_space<vmem>>, vector<1x128x256xbf16>
    %6 = vector.shape_cast %5 : vector<1x128x256xbf16> to vector<128x256xbf16>
    %7 = arith.index_cast %arg1 : i32 to index
    %c0_4 = arith.constant 0 : index
    %c0_5 = arith.constant 0 : index
    %8 = vector.load %arg4[%7, %c0_4, %c0_5] : memref<2x1x256xf32, #tpu.memory_space<vmem>>, vector<1x1x256xf32>
    %9 = vector.shape_cast %8 : vector<1x1x256xf32> to vector<1x256xf32>
    %10 = arith.truncf %3 : vector<8x128xf32> to vector<8x128xbf16>
    %cst = arith.constant dense<0.000000e+00> : vector<8x256xf32>
    %11 = tpu.matmul %10, %6, %cst {dimension_numbers = #tpu.dot_dimension_numbers<[1], [0], [0], [1], [0, 0, 1, 1], [], []>} : vector<8x128xbf16>, vector<128x256xbf16>, vector<8x256xf32> -> vector<8x256xf32>
    %12 = vector.broadcast %9 : vector<1x256xf32> to vector<8x256xf32>
    %13 = arith.addf %11, %12 : vector<8x256xf32>
    %14 = vector.extract_strided_slice %13 {offsets = [0, 0], sizes = [8, 128], strides = [1, 1]} : vector<8x256xf32> to vector<8x128xf32>
    %cst_6 = arith.constant 0.000000e+00 : f32
    %15 = vector.broadcast %cst_6 : f32 to vector<8x128xf32>
    %16 = arith.maximumf %14, %15 : vector<8x128xf32>
    %17 = vector.extract_strided_slice %13 {offsets = [0, 128], sizes = [8, 128], strides = [1, 1]} : vector<8x256xf32> to vector<8x128xf32>
    %18 = arith.negf %17 : vector<8x128xf32>
    %19 = math.exp %18 : vector<8x128xf32>
    %cst_7 = arith.constant 1.000000e+00 : f32
    %20 = vector.broadcast %cst_7 : f32 to vector<8x128xf32>
    %21 = arith.addf %20, %19 : vector<8x128xf32>
    %22 = arith.divf %20, %21 : vector<8x128xf32>
    %23 = arith.subf %3, %16 : vector<8x128xf32>
    %24 = arith.mulf %22, %23 : vector<8x128xf32>
    %25 = arith.addf %16, %24 : vector<8x128xf32>
    %c1_i32 = arith.constant 1 : i32
    %26 = arith.cmpi slt, %arg1, %c1_i32 : i32
    %27 = arith.extui %26 : i1 to i32
    %c0_i32_8 = arith.constant 0 : i32
    %28 = arith.cmpi ne, %27, %c0_i32_8 : i32
    scf.if %28 {
      %c0_11 = arith.constant 0 : index
      %c0_12 = arith.constant 0 : index
      %32 = vector.load %arg6[%c0_11, %c0_12] : memref<8x128xf32, #tpu.memory_space<vmem>>, vector<8x128xf32>
      tpu.vector_store %arg6[%c0_11, %c0_12], %25 {strides = array<i32>} : memref<8x128xf32, #tpu.memory_space<vmem>>, vector<8x128xf32>,
    } else {
    }
    %c1_i32_9 = arith.constant 1 : i32
    %29 = arith.cmpi eq, %arg1, %c1_i32_9 : i32
    %30 = arith.extui %29 : i1 to i32
    %c0_i32_10 = arith.constant 0 : i32
    %31 = arith.cmpi ne, %30, %c0_i32_10 : i32
    scf.if %31 {
      %c0_11 = arith.constant 0 : index
      %c0_12 = arith.constant 0 : index
      %32 = vector.load %arg5[%c0_11, %c0_12] : memref<8x128xf32, #tpu.memory_space<vmem>>, vector<8x128xf32>
      tpu.vector_store %arg5[%c0_11, %c0_12], %25 {strides = array<i32>} : memref<8x128xf32, #tpu.memory_space<vmem>>, vector<8x128xf32>,
    } else {
    }
    return
  }
  func.func @transform_0(%arg0: i32, %arg1: i32) -> (i32, i32) {
    %c0_i32 = arith.constant 0 : i32
    %c0_i32_0 = arith.constant 0 : i32
    return %arg0, %c0_i32 : i32, i32
  }
  func.func @transform_1(%arg0: i32, %arg1: i32) -> (i32, i32, i32) {
    %c0_i32 = arith.constant 0 : i32
    %c0_i32_0 = arith.constant 0 : i32
    %c0_i32_1 = arith.constant 0 : i32
    %c0_i32_2 = arith.constant 0 : i32
    return %c0_i32, %c0_i32_0, %c0_i32_1 : i32, i32, i32
  }
  func.func @transform_2(%arg0: i32, %arg1: i32) -> (i32, i32, i32) {
    %c0_i32 = arith.constant 0 : i32
    %c0_i32_0 = arith.constant 0 : i32
    %c0_i32_1 = arith.constant 0 : i32
    %c0_i32_2 = arith.constant 0 : i32
    return %c0_i32, %c0_i32_0, %c0_i32_1 : i32, i32, i32
  }
  func.func @transform_3(%arg0: i32, %arg1: i32) -> (i32, i32) {
    %c0_i32 = arith.constant 0 : i32
    %c0_i32_0 = arith.constant 0 : i32
    return %arg0, %c0_i32 : i32, i32
  }
}

</mosaic_0001>

<bundles_post_ra>
// kernel: tpu_custom_call.1
= control target key start
LH: loop header
LB: loop body
LE: loop exit
PB: predicated region body
PF: predicated region fallthrough
CT: control target
= control target key end

     0   :  { %8 = vsyncpa [#allocation4], 0  ;;  %s1086_s0 = inlined_call_operand.hbm [shape: f32[16,128], index: 0, kind: input, shape index: {}, may-alias: {0,3}]   ;;  %s1087_s1 = inlined_call_operand.hbm [shape: bf16[2,128,256], index: 1, kind: input, shape index: {}]   ;;  %s1088_s2 = inlined_call_operand.vmem [shape: f32[2,1,256], index: 2, kind: input, shape index: {}]   ;;  %s1089_s3 = inlined_call_operand.hbm [shape: f32[16,128], index: 3, kind: output, shape index: {}, may-alias: {0,3}]  }
   0x1   :  { %10 = vsyncpa [#allocation4 + $0x1], 0 }
   0x2   :  { %11 = vsyncpa [#allocation7], 0 }
   0x3   :  { %12 = vsyncpa [#allocation5], 0 }
   0x4   :  { %14 = vsyncpa [#allocation5 + $0x1], 0  ;;  %s852_s12 = smov 0   ;;  %s854_s13 = smov 0  }
   0x5   :  { %s856_s14 = smov 0   ;;  %s858_s15 = smov 0  }
   0x6   :  { %s860_s16 = smov 0   ;;  %s862_s17 = smov 0  }
   0x7   :  { %s864_s18 = smov 0   ;;  %s866_s19 = smov 0  }
   0x8 LB: > { %s505_s20 = sadd.s32 4294967295, %s824_s19   ;;  %s506_s21 = sadd.s32 4294967294, %s824_s19   ;;  %s824_s19 = sphi %s866_s19, %s20_s19   ;;  %s820_s18 = sphi %s864_s18, %s1113_s18   ;;  %s816_s17 = sphi %s862_s17, %s1112_s17   ;;  %s812_s16 = sphi %s860_s16, %s1111_s16   ;;  %s808_s15 = sphi %s858_s15, %s1110_s15   ;;  %s804_s14 = sphi %s856_s14, %s1109_s14   ;;  %s800_s13 = sphi %s854_s13, %s1108_s13   ;;  %s796_s12 = sphi %s852_s12, %s1107_s12  }
   0x9   : > { %p52_p0 = scmp.ne.s32.totalorder %s800_s13, %s796_s12  ;;  %p896_p1 = scmp.eq.s32.totalorder %s505_s20, 0 }
   0xa   : > { %p900_p2 = scmp.eq.s32.totalorder %s505_s20, 3  ;;  %p124_p3 = scmp.eq.s32.totalorder %s506_s21, 3 }
   0xb   : > { %s1094_s22 = scalar_select %p896_p1, 1, 0 }
   0xc   : > { %s1095_s23 = scalar_select %p900_p2, 1, 0 }
   0xd   : > { %p906_p4 = por %p896_p1, %p52_p0  ;;  %p507_p5 = scmp.ge.s32.totalorder %s824_s19, 1 }
   0xe   : > { %p911_p6 = por %p124_p3, %p52_p0  ;;  %p131_p7 = scmp.lt.s32.totalorder %s824_s19, 5 }
   0xf   : > { %s1096_s24 = scalar_select %p906_p4, 1, 0 }
  0x10   : > { %s1097_s25 = scalar_select %p911_p6, 1, 0 }
  0x11   : > { %p916_p8 = pnand %p507_p5, %p131_p7  ;;  %s826_s27 = smov [#allocation6]  }
  0x12   : > { %s143_s28 = sshll.u32 %s826_s27, 4  ;;  %s664_s5 = scalar_lea.hbm %s1087_s1, 4096  ;;  %s144_s28 = int_to_ptr.vmem [resolvable:$true] %s143_s28 }
  0x13   : > { %s1098_s26 = scalar_select %p916_p8, 1, 0 }
  0x14   : > { %p552_p9 = pneg %p916_p8  ;;  %p665_p11 = scmp.ne.s32.totalorder %s1087_s1, %s664_s5 }
  0x15   : > { %p671_p3 = scmp.lt.u32.totalorder %s664_s5, %s1087_s1 }
  0x16   : > { %p924_p10 = pnand %p552_p9, %p896_p1 }
  0x18   : > { %p666_p12 = pneg %p924_p10 }
  0x1a   : > { %p667_p13 = pnand %p666_p12, %p665_p11 }
  0x1c   : > { %p668_p0 = pneg %p667_p13 }
  0x1e   : > { %p673_p5 = pnand %p671_p3, %p668_p0 }
  0x20   : > { %676 = shalt.err (!%p673_p5)
}
  0x21   : > { %s677_s10 = scalar_lea.vmem %s144_s28, 4096  ;;  %p685_p1 = scmp.lt.s32.totalorder %s144_s28, %s144_s28 }
  0x22   : > { %p678_p7 = scmp.ne.s32.totalorder %s144_s28, %s677_s10  ;;  %p686_p4 = scmp.lt.s32.totalorder %s677_s10, %s677_s10 }
  0x24   : > { %p680_p9 = pnand %p678_p7, %p666_p12  ;;  %p687_p8 = por %p686_p4, %p685_p1 }
  0x26   : > { %p681_p6 = pneg %p680_p9 }
  0x28   : > { %p688_p2 = pnand %p687_p8, %p681_p6 }
  0x2a   : > { %691 = shalt.err (!%p688_p2)
}
  0x2b   : > { %s827_s11 = smov 128   ;;  %s828_s20 = smov 8  }
  0x2c   : > { %555 = dma.hbm_to_vmem [thread:$0]  (!%p924_p10), %s1087_s1, 4096, %s144_s28, [#allocation7], %s827_s11, %s827_s11, %s828_s20  }
  0x2d   : > { %s29_s30 = sadd.s32 1, %s816_s17  ;;  %s32_s4 = sadd.s32 1, %s820_s18 }
  0x2e   : > { %p30_p1 = scmp.ge.s32.totalorder %s29_s30, 2  ;;  %s39_s5 = sadd.s32 1, %s804_s14 }
  0x2f   : > { %p46_p2 = scmp.ne.s32.totalorder %s804_s14, %s800_s13  ;;  %p47_p4 = scmp.eq.s32.totalorder %s824_s19, 0 }
  0x30   : > { %s1115_s30 = smov (%p30_p1, %s29_s30), 0  ;;  %s1117_s4 = smov (!%p30_p1, %s32_s4), %s820_s18 }
  0x31   : > { %p1100_p6 = scmp.ne.s32.totalorder %s1095_s23, 0  ;;  %p34_p11 = scmp.ge.s32.totalorder %s1117_s4, 2 }
  0x32   : > { %p565_p10 = scmp.lt.s32.totalorder %s824_s19, 4  ;;  %p48_p12 = por %p47_p4, %p46_p2 }
  0x33   : > { %p955_p8 = por %p1100_p6, %p46_p2  ;;  %s160_s28 = sand.u32 1, %s804_s14  }
  0x34   : > { %s1119_s4 = smov (%p34_p11, %s1117_s4), 0  ;;  %s510_s6 = sshll.u32 %s160_s28, 3 }
  0x35   : > { %s36_s7 = ssub.s32 %s820_s18, %s1119_s4  ;;  %s511_s8 = sshll.u32 %s820_s18, 7 }
  0x36   : > { %p37_p13 = scmp.eq.s32.totalorder %s36_s7, 0  ;;  %s969_s23 = scalar_lea.hbm %s1086_s0, %s511_s8 }
  0x37   : > { %s164_s11 = scalar_lea.vmem [#allocation3], %s510_s6  ;;  %p978_p0 = pnand %p565_p10, %p48_p12 }
  0x38   : > { %s171_s20 = sshll.u32 %s164_s11, 4  ;;  %s161_s7 = scalar_lea.sflag [#allocation4], %s160_s28  ;;  %s974_s20 = int_to_ptr.vmem [resolvable:$true] %s171_s20 }
  0x39   : > { %s972_s21 = scalar_select %p37_p13, %s804_s14, %s39_s5  }
  0x3a   : > { %s692_s8 = scalar_lea.hbm %s969_s23, 128  ;;  %p694_p5 = pneg %p978_p0 }
  0x3b   : > { %p693_p3 = scmp.ne.s32.totalorder %s969_s23, %s692_s8  ;;  %s697_s9 = scalar_lea.hbm %s1086_s0, 256 }
  0x3c   : > { %p698_p1 = scmp.lt.u32.totalorder %s969_s23, %s1086_s0  ;;  %p699_p2 = scmp.lt.u32.totalorder %s697_s9, %s692_s8 }
  0x3d   : > { %p695_p7 = pnand %p694_p5, %p693_p3  ;;  %p701_p6 = scmp.lt.u32.totalorder %s692_s8, %s969_s23 }
  0x3e   : > { %p700_p4 = por %p699_p2, %p698_p1 }
  0x3f   : > { %p696_p9 = pneg %p695_p7 }
  0x40   : > { %p702_p11 = por %p701_p6, %p700_p4 }
  0x42   : > { %p703_p10 = pnand %p702_p11, %p696_p9 }
  0x44   : > { %706 = shalt.err (!%p703_p10)
}
  0x45   : > { %s707_s28 = scalar_lea.vmem %s974_s20, 128  ;;  %s829_s5 = smov [#allocation3]  }
  0x46   : > { %p708_p12 = scmp.ne.s32.totalorder %s974_s20, %s707_s28  ;;  %s712_s6 = sshll.u32 %s829_s5, 4  ;;  %s713_s6 = int_to_ptr.vmem [resolvable:$false] %s712_s6 }
  0x47   : > { %s714_s10 = scalar_lea.vmem %s713_s6, 256  ;;  %p715_p7 = scmp.lt.s32.totalorder %s974_s20, %s713_s6 }
  0x48   : > { %p710_p13 = pnand %p708_p12, %p694_p5  ;;  %p716_p1 = scmp.lt.s32.totalorder %s714_s10, %s707_s28 }
  0x4a   : > { %p711_p3 = pneg %p710_p13  ;;  %p717_p2 = por %p716_p1, %p715_p7 }
  0x4c   : > { %p718_p4 = pnand %p717_p2, %p711_p3 }
  0x4e   : > { %721 = shalt.err (!%p718_p4)
}
  0x4f   : > { %559 = dma.hbm_to_vmem [thread:$0]  (!%p978_p0), %s969_s23, 128, %s974_s20, %s161_s7  }
  0x50   : > { %p1103_p9 = scmp.ne.s32.totalorder %s1098_s26, 0 }
  0x51   : > { %s1010_s8 = sand.u32 (!%p1103_p9), 1, %s800_s13   ;;  %p1104_p5 = scmp.ne.s32.totalorder (!%p1103_p9), %s1096_s24, 0 }
  0x52   : > { %180 = sbr.rel (%p1103_p9) target bundleno = 416 (0x1a0), region = 32  ;;  %s513_s9 = sshll.u32 (!%p1103_p9), %s1010_s8, 3 }
  0x53   : > { %s183_s11 = scalar_lea.sflag (!%p1103_p9), [#allocation4], %s1010_s8  ;;  %s186_s28 = scalar_lea.vmem (!%p1103_p9), [#allocation3], %s513_s9 }
  0x59   : > { %783 = dma.done.wait (%p1104_p5), %s183_s11, 128  }
  0x5a   : > { %785 = vsyncadd (%p1104_p5), %s183_s11, 4294967168  ;;  %p1105_p6 = scmp.ne.s32.totalorder %s1094_s22, 0 }
  0x5c   : > { %787 = dma.done.wait (%p1105_p6), [#allocation7], 4096  }
  0x5d   : > { %789 = vsyncadd (%p1105_p6), [#allocation7], 4294963200  ;;  %s1022_s26 = scalar_lea.vmem [#allocation8], %s513_s9  ;;  %p516_p0 = scmp.ne.s32.totalorder %s808_s15, 0 }
  0x5e   : > { %v218_v0 = vld [vmem:[%s186_s28] sm:$0xff] (!%p516_p0) }
  0x5f   : > { %217 = sbr.rel (%p516_p0) target bundleno = 102 (0x66), region = 44  ;;  %219 = vst [vmem:[#allocation2] sm:$0xff] (!%p516_p0), %v218_v0 }
  0x66 PF: > { %s543_s23 = sshll.u32 %s808_s15, 7  ;;  %v830_v1 = vmov 0   ;;  %v220_v18 = vld [vmem:[#allocation2] sm:$0xff]  ;;  %v245_v20 = vlaneseq  ;;  %s519_s22 = sshll.u32 %s808_s15, 1 }
  0x67   : > { %367 = vmatprep.mubr.bf16.mxu0 %v830_v1  ;;  %s223_s24 = scalar_lea.vmem [#allocation6], %s543_s23  ;;  %v243_v19 = vpack.c.bf16 %v220_v18, %v220_v18  ;;  %s241_s7 = scalar_lea.vmem %s1088_s2, %s519_s22 }
  0x68   : > { %v636_v2 = vld [vmem:[%s223_s24 + $0x4] ss:$8 sps:$4 sm:$0xff]   ;;  %v638_v3 = vld [vmem:[%s223_s24] ss:$8 sps:$4 sm:$0xff]   ;;  %v639_v4 = vld [vmem:[%s223_s24 + $0x14] ss:$8 sps:$4 sm:$0xff]  }
  0x69   : > { %335 = vmatprep.subr.bf16.mxu0 %v636_v2  ;;  %v641_v5 = vld [vmem:[%s223_s24 + $0x10] ss:$8 sps:$4 sm:$0xff]   ;;  %v642_v6 = vld [vmem:[%s223_s24 + $0x24] ss:$8 sps:$4 sm:$0xff]   ;;  %v644_v7 = vld [vmem:[%s223_s24 + $0x20] ss:$8 sps:$4 sm:$0xff]  }
  0x6a   : > { %336 = vmatpush1.bf16.msra.mxu0 %v638_v3  ;;  %v645_v8 = vld [vmem:[%s223_s24 + $0x34] ss:$8 sps:$4 sm:$0xff]   ;;  %v647_v9 = vld [vmem:[%s223_s24 + $0x30] ss:$8 sps:$4 sm:$0xff]   ;;  %v648_v10 = vld [vmem:[%s223_s24 + $0x44] ss:$8 sps:$4 sm:$0xff]  }
  0x6b   : > { %337 = vmatprep.subr.bf16.mxu0 %v639_v4  ;;  %v650_v11 = vld [vmem:[%s223_s24 + $0x40] ss:$8 sps:$4 sm:$0xff]   ;;  %v651_v12 = vld [vmem:[%s223_s24 + $0x54] ss:$8 sps:$4 sm:$0xff]   ;;  %v653_v13 = vld [vmem:[%s223_s24 + $0x50] ss:$8 sps:$4 sm:$0xff]  }
  0x6c   : > { %v654_v14 = vld [vmem:[%s223_s24 + $0x64] ss:$8 sps:$4 sm:$0xff]   ;;  %v656_v15 = vld [vmem:[%s223_s24 + $0x60] ss:$8 sps:$4 sm:$0xff]   ;;  %v657_v16 = vld [vmem:[%s223_s24 + $0x74] ss:$8 sps:$4 sm:$0xff]  }
  0x6d   : > { %v659_v17 = vld [vmem:[%s223_s24 + $0x70] ss:$8 sps:$4 sm:$0xff]   ;;  %v246_v21 = vshrl.u32 %v245_v20, 7  ;;  %v242_v23 = vld [vmem:[%s241_s7] sm:$0x3]  ;;  %p537_p11 = scmp.ge.s32.totalorder %s808_s15, 1 }
  0x6e   : > { %338 = vmatpush1.bf16.msra.mxu0 %v641_v5 }
  0x6f   : > { %339 = vmatprep.subr.bf16.mxu0 %v642_v6  ;;  %v251_v22 = vsub.s32 1, %v246_v21  ;;  %v247_v31 = vsub.s32 0, %v246_v21 }
  0x71   : > { %v252_v24 = vrot.slane %v242_v23, %v251_v22  ;;  %v248_v33 = vrot.slane %v242_v23, %v247_v31 }
  0x72   : > { %340 = vmatpush1.bf16.msra.mxu0 %v644_v7 }
  0x73   : > { %341 = vmatprep.subr.bf16.mxu0 %v645_v8 }
  0x76   : > { %342 = vmatpush1.bf16.msra.mxu0 %v647_v9 }
  0x77   : > { %343 = vmatprep.subr.bf16.mxu0 %v648_v10 }
  0x7a   : > { %344 = vmatpush1.bf16.msra.mxu0 %v650_v11 }
  0x7b   : > { %345 = vmatprep.subr.bf16.mxu0 %v651_v12 }
  0x7e   : > { %346 = vmatpush1.bf16.msra.mxu0 %v653_v13 }
  0x7f   : > { %347 = vmatprep.subr.bf16.mxu0 %v654_v14 }
  0x82   : > { %348 = vmatpush1.bf16.msra.mxu0 %v656_v15 }
  0x83   : > { %349 = vmatprep.subr.bf16.mxu0 %v657_v16 }
  0x86   : > { %350 = vmatpush1.bf16.msra.mxu0 %v659_v17 }
  0x89   : > { %368 = vmatmul.mubr.bf16.vlgmr.msra.gmra.mrb[0].mxu0 %v243_v19 }
 0x15c   : > { %v369_v25 = vpop.f32.mrb[0].mxu0 }
 0x15d   : > { %v371_v26 = vpop.f32.mrb[1].mxu0  ;;  %v370_v35 = vadd.f32 %v369_v25, %v248_v33 }
 0x15e   : > { %v372_v27 = vadd.f32 %v371_v26, %v252_v24  ;;  %v373_v28 = vpop.f32.mrb[2].mxu0 }
 0x15f   : > { %v374_v29 = vpop.f32.mrb[3].mxu0  ;;  %v376_v36 = vmax.f32 %v370_v35, 0.0 }
 0x160   : > { %v536_v30 = vmul.f32 -1.442695, %v372_v27 }
 0x161   : > { %v383_v37 = vsub.f32 %v220_v18, %v376_v36 }
 0x162   : > { %660 = vpow2.f32 %v536_v30 }
 0x16c   : > { %v661_v32 = vpop.eup %660 }
 0x16d   : > { %v380_v34 = vadd.f32 1.0, %v661_v32 }
 0x16f   : > { %662 = vrcp.f32 %v380_v34 }
 0x176   : > { %389 = sbr.rel (%p537_p11) target bundleno = 383 (0x17f), region = 48 }
 0x179   : > { %v663_v38 = vpop.eup %662 }
 0x17a   : > { %v384_v39 = vmul.f32 %v663_v38, %v383_v37 }
 0x17c   : > { %v385_v40 = vadd.f32 %v384_v39, %v376_v36 }
 0x17e   : > { %390 = vst [vmem:[#allocation2] sm:$0xff] %v385_v40 }
 0x17f PF: > { %p538_p10 = scmp.ne.s32.totalorder %s808_s15, 1 }
 0x180   : > { %395 = vst [vmem:[%s1022_s26] sm:$0xff] (!%p538_p10), %v385_v40 }
 0x181   : > { %394 = sbr.rel (%p538_p10) target bundleno = 392 (0x188), region = 52 }
 0x188 PF: > { %s540_s5 = sshll.u32 %s812_s16, 7  ;;  %s410_s11 = sshll.u32 %s1022_s26, 4  ;;  %s411_s11 = int_to_ptr.vmem [resolvable:$true] %s410_s11 }
 0x189   : > { %s1037_s9 = scalar_lea.hbm %s1089_s3, %s540_s5  ;;  %s397_s28 = scalar_lea.sflag [#allocation5], %s1010_s8 }
 0x18a   : > { %s722_s23 = scalar_lea.vmem %s411_s11, 128  ;;  %s831_s15 = smov [#allocation8]  }
 0x18b   : > { %p723_p12 = scmp.ne.s32.totalorder %s411_s11, %s722_s23  ;;  %s726_s24 = sshll.u32 %s831_s15, 4  ;;  %s727_s24 = int_to_ptr.vmem [resolvable:$false] %s726_s24 }
 0x18c   : > { %s728_s22 = scalar_lea.vmem %s727_s24, 256  ;;  %p729_p7 = scmp.lt.s32.totalorder %s411_s11, %s727_s24 }
 0x18d   : > { %p724_p13 = pnand %p723_p12, %p955_p8  ;;  %p730_p1 = scmp.lt.s32.totalorder %s728_s22, %s722_s23 }
 0x18f   : > { %p725_p3 = pneg %p724_p13  ;;  %p731_p2 = por %p730_p1, %p729_p7 }
 0x191   : > { %p732_p4 = pnand %p731_p2, %p725_p3 }
 0x193   : > { %735 = shalt.err (!%p732_p4)
}
 0x194   : > { %s736_s16 = scalar_lea.hbm %s1037_s9, 128  ;;  %s740_s20 = scalar_lea.hbm %s1089_s3, 256 }
 0x195   : > { %p737_p9 = scmp.ne.s32.totalorder %s1037_s9, %s736_s16  ;;  %p741_p0 = scmp.lt.u32.totalorder %s1037_s9, %s1089_s3 }
 0x196   : > { %p742_p11 = scmp.lt.u32.totalorder %s740_s20, %s736_s16  ;;  %p744_p12 = scmp.lt.u32.totalorder %s736_s16, %s1037_s9 }
 0x197   : > { %p738_p5 = pnand %p737_p9, %p955_p8 }
 0x198   : > { %p743_p10 = por %p742_p11, %p741_p0 }
 0x199   : > { %p739_p6 = pneg %p738_p5 }
 0x19a   : > { %p745_p13 = por %p744_p12, %p743_p10 }
 0x19c   : > { %p746_p3 = pnand %p745_p13, %p739_p6 }
 0x19e   : > { %749 = shalt.err (!%p746_p3)
}
 0x19f   : > { %550 = dma.vmem_to_hbm [thread:$0]  (%p955_p8), %s411_s11, 128, %s1037_s9, %s397_s28  }
 0x1a0 PF: > { %p567_p7 = scmp.ge.s32.totalorder %s824_s19, 2  ;;  %s422_s5 = sand.u32 1, %s796_s12  }
 0x1a1   : > { %p1106_p1 = scmp.ne.s32.totalorder %s1097_s25, 0  ;;  %s423_s6 = scalar_lea.sflag [#allocation5], %s422_s5 }
 0x1a3   : > { %p561_p2 = pnand %p567_p7, %p1106_p1 }
 0x1a5   : > { %791 = dma.done.wait (!%p561_p2), %s423_s6, 128  }
 0x1a6   : > { %793 = vsyncadd (!%p561_p2), %s423_s6, 4294967168  ;;  %s20_s19 = sadd.s32 1, %s824_s19   ;;  %s1107_s12 = smov %s800_s13 }
 0x1a7   : > { %p17_p4 = scmp.ge.s32.totalorder %s20_s19, 6   ;;  %s1108_s13 = smov %s804_s14 }
 0x1a8   : > { %s1109_s14 = smov %s972_s21  ;;  %s1110_s15 = smov %s816_s17 }
 0x1a9   : > { %s1111_s16 = smov %s820_s18  ;;  %s1112_s17 = smov %s1115_s30 }
 0x1aa   : > { %s1113_s18 = smov %s1119_s4  ;;  %19 = sbr.rel (!%p17_p4) target bundleno = 8 (0x8), region = 95 }
 0x1b1   :  { %428 = vsyncpa [#allocation4], 1 }
 0x1b2   :  { %430 = vsyncpa [#allocation4 + $0x1], 1 }
 0x1b3   :  { %431 = vsyncpa [#allocation7], 1 }
 0x1b4   :  { %432 = vsyncpa [#allocation5], 1 }
 0x1b5   :  { %434 = vsyncpa [#allocation5 + $0x1], 1 }

// kernel: tpu_custom_call.1
= control target key start
LH: loop header
LB: loop body
LE: loop exit
PB: predicated region body
PF: predicated region fallthrough
CT: control target
= control target key end

     0   :  { %8 = vsyncpa [#allocation4], 0  ;;  %s1086_s0 = inlined_call_operand.hbm [shape: f32[16,128], index: 0, kind: input, shape index: {}, may-alias: {0,3}]   ;;  %s1087_s1 = inlined_call_operand.hbm [shape: bf16[2,128,256], index: 1, kind: input, shape index: {}]   ;;  %s1088_s2 = inlined_call_operand.vmem [shape: f32[2,1,256], index: 2, kind: input, shape index: {}]   ;;  %s1089_s3 = inlined_call_operand.hbm [shape: f32[16,128], index: 3, kind: output, shape index: {}, may-alias: {0,3}]  }
   0x1   :  { %10 = vsyncpa [#allocation4 + $0x1], 0 }
   0x2   :  { %11 = vsyncpa [#allocation7], 0 }
   0x3   :  { %12 = vsyncpa [#allocation5], 0 }
   0x4   :  { %14 = vsyncpa [#allocation5 + $0x1], 0  ;;  %s852_s12 = smov 0   ;;  %s854_s13 = smov 0  }
   0x5   :  { %s856_s14 = smov 0   ;;  %s858_s15 = smov 0  }
   0x6   :  { %s860_s16 = smov 0   ;;  %s862_s17 = smov 0  }
   0x7   :  { %s864_s18 = smov 0   ;;  %s866_s19 = smov 0  }
   0x8 LB: > { %s505_s20 = sadd.s32 4294967295, %s824_s19   ;;  %s506_s21 = sadd.s32 4294967294, %s824_s19   ;;  %s824_s19 = sphi %s866_s19, %s20_s19   ;;  %s820_s18 = sphi %s864_s18, %s1113_s18   ;;  %s816_s17 = sphi %s862_s17, %s1112_s17   ;;  %s812_s16 = sphi %s860_s16, %s1111_s16   ;;  %s808_s15 = sphi %s858_s15, %s1110_s15   ;;  %s804_s14 = sphi %s856_s14, %s1109_s14   ;;  %s800_s13 = sphi %s854_s13, %s1108_s13   ;;  %s796_s12 = sphi %s852_s12, %s1107_s12  }
   0x9   : > { %p52_p0 = scmp.ne.s32.totalorder %s800_s13, %s796_s12  ;;  %p896_p1 = scmp.eq.s32.totalorder %s505_s20, 0 }
   0xa   : > { %p900_p2 = scmp.eq.s32.totalorder %s505_s20, 3  ;;  %p124_p3 = scmp.eq.s32.totalorder %s506_s21, 3 }
   0xb   : > { %s1094_s22 = scalar_select %p896_p1, 1, 0 }
   0xc   : > { %s1095_s23 = scalar_select %p900_p2, 1, 0 }
   0xd   : > { %p906_p4 = por %p896_p1, %p52_p0  ;;  %p507_p5 = scmp.ge.s32.totalorder %s824_s19, 1 }
   0xe   : > { %p911_p6 = por %p124_p3, %p52_p0  ;;  %p131_p7 = scmp.lt.s32.totalorder %s824_s19, 5 }
   0xf   : > { %s1096_s24 = scalar_select %p906_p4, 1, 0 }
  0x10   : > { %s1097_s25 = scalar_select %p911_p6, 1, 0 }
  0x11   : > { %p916_p8 = pnand %p507_p5, %p131_p7  ;;  %s826_s27 = smov [#allocation6]  }
  0x12   : > { %s143_s28 = sshll.u32 %s826_s27, 4  ;;  %s664_s5 = scalar_lea.hbm %s1087_s1, 4096  ;;  %s144_s28 = int_to_ptr.vmem [resolvable:$true] %s143_s28 }
  0x13   : > { %s1098_s26 = scalar_select %p916_p8, 1, 0 }
  0x14   : > { %p552_p9 = pneg %p916_p8  ;;  %p665_p11 = scmp.ne.s32.totalorder %s1087_s1, %s664_s5 }
  0x15   : > { %p671_p3 = scmp.lt.u32.totalorder %s664_s5, %s1087_s1 }
  0x16   : > { %p924_p10 = pnand %p552_p9, %p896_p1 }
  0x18   : > { %p666_p12 = pneg %p924_p10 }
  0x1a   : > { %p667_p13 = pnand %p666_p12, %p665_p11 }
  0x1c   : > { %p668_p0 = pneg %p667_p13 }
  0x1e   : > { %p673_p5 = pnand %p671_p3, %p668_p0 }
  0x20   : > { %676 = shalt.err (!%p673_p5)
}
  0x21   : > { %s677_s10 = scalar_lea.vmem %s144_s28, 4096  ;;  %p685_p1 = scmp.lt.s32.totalorder %s144_s28, %s144_s28 }
  0x22   : > { %p678_p7 = scmp.ne.s32.totalorder %s144_s28, %s677_s10  ;;  %p686_p4 = scmp.lt.s32.totalorder %s677_s10, %s677_s10 }
  0x24   : > { %p680_p9 = pnand %p678_p7, %p666_p12  ;;  %p687_p8 = por %p686_p4, %p685_p1 }
  0x26   : > { %p681_p6 = pneg %p680_p9 }
  0x28   : > { %p688_p2 = pnand %p687_p8, %p681_p6 }
  0x2a   : > { %691 = shalt.err (!%p688_p2)
}
  0x2b   : > { %s827_s11 = smov 128   ;;  %s828_s20 = smov 8  }
  0x2c   : > { %555 = dma.hbm_to_vmem [thread:$0]  (!%p924_p10), %s1087_s1, 4096, %s144_s28, [#allocation7], %s827_s11, %s827_s11, %s828_s20  }
  0x2d   : > { %s29_s30 = sadd.s32 1, %s816_s17  ;;  %s32_s4 = sadd.s32 1, %s820_s18 }
  0x2e   : > { %p30_p1 = scmp.ge.s32.totalorder %s29_s30, 2  ;;  %s39_s5 = sadd.s32 1, %s804_s14 }
  0x2f   : > { %p46_p2 = scmp.ne.s32.totalorder %s804_s14, %s800_s13  ;;  %p47_p4 = scmp.eq.s32.totalorder %s824_s19, 0 }
  0x30   : > { %s1115_s30 = smov (%p30_p1, %s29_s30), 0  ;;  %s1117_s4 = smov (!%p30_p1, %s32_s4), %s820_s18 }
  0x31   : > { %p1100_p6 = scmp.ne.s32.totalorder %s1095_s23, 0  ;;  %p34_p11 = scmp.ge.s32.totalorder %s1117_s4, 2 }
  0x32   : > { %p565_p10 = scmp.lt.s32.totalorder %s824_s19, 4  ;;  %p48_p12 = por %p47_p4, %p46_p2 }
  0x33   : > { %p955_p8 = por %p1100_p6, %p46_p2  ;;  %s160_s28 = sand.u32 1, %s804_s14  }
  0x34   : > { %s1119_s4 = smov (%p34_p11, %s1117_s4), 0  ;;  %s510_s6 = sshll.u32 %s160_s28, 3 }
  0x35   : > { %s36_s7 = ssub.s32 %s820_s18, %s1119_s4  ;;  %s511_s8 = sshll.u32 %s820_s18, 7 }
  0x36   : > { %p37_p13 = scmp.eq.s32.totalorder %s36_s7, 0  ;;  %s969_s23 = scalar_lea.hbm %s1086_s0, %s511_s8 }
  0x37   : > { %s164_s11 = scalar_lea.vmem [#allocation3], %s510_s6  ;;  %p978_p0 = pnand %p565_p10, %p48_p12 }
  0x38   : > { %s171_s20 = sshll.u32 %s164_s11, 4  ;;  %s161_s7 = scalar_lea.sflag [#allocation4], %s160_s28  ;;  %s974_s20 = int_to_ptr.vmem [resolvable:$true] %s171_s20 }
  0x39   : > { %s972_s21 = scalar_select %p37_p13, %s804_s14, %s39_s5  }
  0x3a   : > { %s692_s8 = scalar_lea.hbm %s969_s23, 128  ;;  %p694_p5 = pneg %p978_p0 }
  0x3b   : > { %p693_p3 = scmp.ne.s32.totalorder %s969_s23, %s692_s8  ;;  %s697_s9 = scalar_lea.hbm %s1086_s0, 256 }
  0x3c   : > { %p698_p1 = scmp.lt.u32.totalorder %s969_s23, %s1086_s0  ;;  %p699_p2 = scmp.lt.u32.totalorder %s697_s9, %s692_s8 }
  0x3d   : > { %p695_p7 = pnand %p694_p5, %p693_p3  ;;  %p701_p6 = scmp.lt.u32.totalorder %s692_s8, %s969_s23 }
  0x3e   : > { %p700_p4 = por %p699_p2, %p698_p1 }
  0x3f   : > { %p696_p9 = pneg %p695_p7 }
  0x40   : > { %p702_p11 = por %p701_p6, %p700_p4 }
  0x42   : > { %p703_p10 = pnand %p702_p11, %p696_p9 }
  0x44   : > { %706 = shalt.err (!%p703_p10)
}
  0x45   : > { %s707_s28 = scalar_lea.vmem %s974_s20, 128  ;;  %s829_s5 = smov [#allocation3]  }
  0x46   : > { %p708_p12 = scmp.ne.s32.totalorder %s974_s20, %s707_s28  ;;  %s712_s6 = sshll.u32 %s829_s5, 4  ;;  %s713_s6 = int_to_ptr.vmem [resolvable:$false] %s712_s6 }
  0x47   : > { %s714_s10 = scalar_lea.vmem %s713_s6, 256  ;;  %p715_p7 = scmp.lt.s32.totalorder %s974_s20, %s713_s6 }
  0x48   : > { %p710_p13 = pnand %p708_p12, %p694_p5  ;;  %p716_p1 = scmp.lt.s32.totalorder %s714_s10, %s707_s28 }
  0x4a   : > { %p711_p3 = pneg %p710_p13  ;;  %p717_p2 = por %p716_p1, %p715_p7 }
  0x4c   : > { %p718_p4 = pnand %p717_p2, %p711_p3 }
  0x4e   : > { %721 = shalt.err (!%p718_p4)
}
  0x4f   : > { %559 = dma.hbm_to_vmem [thread:$0]  (!%p978_p0), %s969_s23, 128, %s974_s20, %s161_s7  }
  0x50   : > { %p1103_p9 = scmp.ne.s32.totalorder %s1098_s26, 0 }
  0x51   : > { %s1010_s8 = sand.u32 (!%p1103_p9), 1, %s800_s13   ;;  %p1104_p5 = scmp.ne.s32.totalorder (!%p1103_p9), %s1096_s24, 0 }
  0x52   : > { %180 = sbr.rel (%p1103_p9) target bundleno = 416 (0x1a0), region = 32  ;;  %s513_s9 = sshll.u32 (!%p1103_p9), %s1010_s8, 3 }
  0x53   : > { %s183_s11 = scalar_lea.sflag (!%p1103_p9), [#allocation4], %s1010_s8  ;;  %s186_s28 = scalar_lea.vmem (!%p1103_p9), [#allocation3], %s513_s9 }
  0x59   : > { %783 = dma.done.wait (%p1104_p5), %s183_s11, 128  }
  0x5a   : > { %785 = vsyncadd (%p1104_p5), %s183_s11, 4294967168  ;;  %p1105_p6 = scmp.ne.s32.totalorder %s1094_s22, 0 }
  0x5c   : > { %787 = dma.done.wait (%p1105_p6), [#allocation7], 4096  }
  0x5d   : > { %789 = vsyncadd (%p1105_p6), [#allocation7], 4294963200  ;;  %s1022_s26 = scalar_lea.vmem [#allocation8], %s513_s9  ;;  %p516_p0 = scmp.ne.s32.totalorder %s808_s15, 0 }
  0x5e   : > { %v218_v0 = vld [vmem:[%s186_s28] sm:$0xff] (!%p516_p0) }
  0x5f   : > { %217 = sbr.rel (%p516_p0) target bundleno = 102 (0x66), region = 44  ;;  %219 = vst [vmem:[#allocation2] sm:$0xff] (!%p516_p0), %v218_v0 }
  0x66 PF: > { %s543_s23 = sshll.u32 %s808_s15, 7  ;;  %v830_v1 = vmov 0   ;;  %v220_v18 = vld [vmem:[#allocation2] sm:$0xff]  ;;  %v245_v20 = vlaneseq  ;;  %s519_s22 = sshll.u32 %s808_s15, 1 }
  0x67   : > { %367 = vmatprep.mubr.bf16.mxu0 %v830_v1  ;;  %s223_s24 = scalar_lea.vmem [#allocation6], %s543_s23  ;;  %v243_v19 = vpack.c.bf16 %v220_v18, %v220_v18  ;;  %s241_s7 = scalar_lea.vmem %s1088_s2, %s519_s22 }
  0x68   : > { %v636_v2 = vld [vmem:[%s223_s24 + $0x4] ss:$8 sps:$4 sm:$0xff]   ;;  %v638_v3 = vld [vmem:[%s223_s24] ss:$8 sps:$4 sm:$0xff]   ;;  %v639_v4 = vld [vmem:[%s223_s24 + $0x14] ss:$8 sps:$4 sm:$0xff]  }
  0x69   : > { %335 = vmatprep.subr.bf16.mxu0 %v636_v2  ;;  %v641_v5 = vld [vmem:[%s223_s24 + $0x10] ss:$8 sps:$4 sm:$0xff]   ;;  %v642_v6 = vld [vmem:[%s223_s24 + $0x24] ss:$8 sps:$4 sm:$0xff]   ;;  %v644_v7 = vld [vmem:[%s223_s24 + $0x20] ss:$8 sps:$4 sm:$0xff]  }
  0x6a   : > { %336 = vmatpush1.bf16.msra.mxu0 %v638_v3  ;;  %v645_v8 = vld [vmem:[%s223_s24 + $0x34] ss:$8 sps:$4 sm:$0xff]   ;;  %v647_v9 = vld [vmem:[%s223_s24 + $0x30] ss:$8 sps:$4 sm:$0xff]   ;;  %v648_v10 = vld [vmem:[%s223_s24 + $0x44] ss:$8 sps:$4 sm:$0xff]  }
  0x6b   : > { %337 = vmatprep.subr.bf16.mxu0 %v639_v4  ;;  %v650_v11 = vld [vmem:[%s223_s24 + $0x40] ss:$8 sps:$4 sm:$0xff]   ;;  %v651_v12 = vld [vmem:[%s223_s24 + $0x54] ss:$8 sps:$4 sm:$0xff]   ;;  %v653_v13 = vld [vmem:[%s223_s24 + $0x50] ss:$8 sps:$4 sm:$0xff]  }
  0x6c   : > { %v654_v14 = vld [vmem:[%s223_s24 + $0x64] ss:$8 sps:$4 sm:$0xff]   ;;  %v656_v15 = vld [vmem:[%s223_s24 + $0x60] ss:$8 sps:$4 sm:$0xff]   ;;  %v657_v16 = vld [vmem:[%s223_s24 + $0x74] ss:$8 sps:$4 sm:$0xff]  }
  0x6d   : > { %v659_v17 = vld [vmem:[%s223_s24 + $0x70] ss:$8 sps:$4 sm:$0xff]   ;;  %v246_v21 = vshrl.u32 %v245_v20, 7  ;;  %v242_v23 = vld [vmem:[%s241_s7] sm:$0x3]  ;;  %p537_p11 = scmp.ge.s32.totalorder %s808_s15, 1 }
  0x6e   : > { %338 = vmatpush1.bf16.msra.mxu0 %v641_v5 }
  0x6f   : > { %339 = vmatprep.subr.bf16.mxu0 %v642_v6  ;;  %v251_v22 = vsub.s32 1, %v246_v21  ;;  %v247_v31 = vsub.s32 0, %v246_v21 }
  0x71   : > { %v252_v24 = vrot.slane %v242_v23, %v251_v22  ;;  %v248_v33 = vrot.slane %v242_v23, %v247_v31 }
  0x72   : > { %340 = vmatpush1.bf16.msra.mxu0 %v644_v7 }
  0x73   : > { %341 = vmatprep.subr.bf16.mxu0 %v645_v8 }
  0x76   : > { %342 = vmatpush1.bf16.msra.mxu0 %v647_v9 }
  0x77   : > { %343 = vmatprep.subr.bf16.mxu0 %v648_v10 }
  0x7a   : > { %344 = vmatpush1.bf16.msra.mxu0 %v650_v11 }
  0x7b   : > { %345 = vmatprep.subr.bf16.mxu0 %v651_v12 }
  0x7e   : > { %346 = vmatpush1.bf16.msra.mxu0 %v653_v13 }
  0x7f   : > { %347 = vmatprep.subr.bf16.mxu0 %v654_v14 }
  0x82   : > { %348 = vmatpush1.bf16.msra.mxu0 %v656_v15 }
  0x83   : > { %349 = vmatprep.subr.bf16.mxu0 %v657_v16 }
  0x86   : > { %350 = vmatpush1.bf16.msra.mxu0 %v659_v17 }
  0x89   : > { %368 = vmatmul.mubr.bf16.vlgmr.msra.gmra.mrb[0].mxu0 %v243_v19 }
 0x15c   : > { %v369_v25 = vpop.f32.mrb[0].mxu0 }
 0x15d   : > { %v371_v26 = vpop.f32.mrb[1].mxu0  ;;  %v370_v35 = vadd.f32 %v369_v25, %v248_v33 }
 0x15e   : > { %v372_v27 = vadd.f32 %v371_v26, %v252_v24  ;;  %v373_v28 = vpop.f32.mrb[2].mxu0 }
 0x15f   : > { %v374_v29 = vpop.f32.mrb[3].mxu0  ;;  %v376_v36 = vmax.f32 %v370_v35, 0.0 }
 0x160   : > { %v536_v30 = vmul.f32 -1.442695, %v372_v27 }
 0x161   : > { %v383_v37 = vsub.f32 %v220_v18, %v376_v36 }
 0x162   : > { %660 = vpow2.f32 %v536_v30 }
 0x16c   : > { %v661_v32 = vpop.eup %660 }
 0x16d   : > { %v380_v34 = vadd.f32 1.0, %v661_v32 }
 0x16f   : > { %662 = vrcp.f32 %v380_v34 }
 0x176   : > { %389 = sbr.rel (%p537_p11) target bundleno = 383 (0x17f), region = 48 }
 0x179   : > { %v663_v38 = vpop.eup %662 }
 0x17a   : > { %v384_v39 = vmul.f32 %v663_v38, %v383_v37 }
 0x17c   : > { %v385_v40 = vadd.f32 %v384_v39, %v376_v36 }
 0x17e   : > { %390 = vst [vmem:[#allocation2] sm:$0xff] %v385_v40 }
 0x17f PF: > { %p538_p10 = scmp.ne.s32.totalorder %s808_s15, 1 }
 0x180   : > { %395 = vst [vmem:[%s1022_s26] sm:$0xff] (!%p538_p10), %v385_v40 }
 0x181   : > { %394 = sbr.rel (%p538_p10) target bundleno = 392 (0x188), region = 52 }
 0x188 PF: > { %s540_s5 = sshll.u32 %s812_s16, 7  ;;  %s410_s11 = sshll.u32 %s1022_s26, 4  ;;  %s411_s11 = int_to_ptr.vmem [resolvable:$true] %s410_s11 }
 0x189   : > { %s1037_s9 = scalar_lea.hbm %s1089_s3, %s540_s5  ;;  %s397_s28 = scalar_lea.sflag [#allocation5], %s1010_s8 }
 0x18a   : > { %s722_s23 = scalar_lea.vmem %s411_s11, 128  ;;  %s831_s15 = smov [#allocation8]  }
 0x18b   : > { %p723_p12 = scmp.ne.s32.totalorder %s411_s11, %s722_s23  ;;  %s726_s24 = sshll.u32 %s831_s15, 4  ;;  %s727_s24 = int_to_ptr.vmem [resolvable:$false] %s726_s24 }
 0x18c   : > { %s728_s22 = scalar_lea.vmem %s727_s24, 256  ;;  %p729_p7 = scmp.lt.s32.totalorder %s411_s11, %s727_s24 }
 0x18d   : > { %p724_p13 = pnand %p723_p12, %p955_p8  ;;  %p730_p1 = scmp.lt.s32.totalorder %s728_s22, %s722_s23 }
 0x18f   : > { %p725_p3 = pneg %p724_p13  ;;  %p731_p2 = por %p730_p1, %p729_p7 }
 0x191   : > { %p732_p4 = pnand %p731_p2, %p725_p3 }
 0x193   : > { %735 = shalt.err (!%p732_p4)
}
 0x194   : > { %s736_s16 = scalar_lea.hbm %s1037_s9, 128  ;;  %s740_s20 = scalar_lea.hbm %s1089_s3, 256 }
 0x195   : > { %p737_p9 = scmp.ne.s32.totalorder %s1037_s9, %s736_s16  ;;  %p741_p0 = scmp.lt.u32.totalorder %s1037_s9, %s1089_s3 }
 0x196   : > { %p742_p11 = scmp.lt.u32.totalorder %s740_s20, %s736_s16  ;;  %p744_p12 = scmp.lt.u32.totalorder %s736_s16, %s1037_s9 }
 0x197   : > { %p738_p5 = pnand %p737_p9, %p955_p8 }
 0x198   : > { %p743_p10 = por %p742_p11, %p741_p0 }
 0x199   : > { %p739_p6 = pneg %p738_p5 }
 0x19a   : > { %p745_p13 = por %p744_p12, %p743_p10 }
 0x19c   : > { %p746_p3 = pnand %p745_p13, %p739_p6 }
 0x19e   : > { %749 = shalt.err (!%p746_p3)
}
 0x19f   : > { %550 = dma.vmem_to_hbm [thread:$0]  (%p955_p8), %s411_s11, 128, %s1037_s9, %s397_s28  }
 0x1a0 PF: > { %p567_p7 = scmp.ge.s32.totalorder %s824_s19, 2  ;;  %s422_s5 = sand.u32 1, %s796_s12  }
 0x1a1   : > { %p1106_p1 = scmp.ne.s32.totalorder %s1097_s25, 0  ;;  %s423_s6 = scalar_lea.sflag [#allocation5], %s422_s5 }
 0x1a3   : > { %p561_p2 = pnand %p567_p7, %p1106_p1 }
 0x1a5   : > { %791 = dma.done.wait (!%p561_p2), %s423_s6, 128  }
 0x1a6   : > { %793 = vsyncadd (!%p561_p2), %s423_s6, 4294967168  ;;  %s20_s19 = sadd.s32 1, %s824_s19   ;;  %s1107_s12 = smov %s800_s13 }
 0x1a7   : > { %p17_p4 = scmp.ge.s32.totalorder %s20_s19, 6   ;;  %s1108_s13 = smov %s804_s14 }
 0x1a8   : > { %s1109_s14 = smov %s972_s21  ;;  %s1110_s15 = smov %s816_s17 }
 0x1a9   : > { %s1111_s16 = smov %s820_s18  ;;  %s1112_s17 = smov %s1115_s30 }
 0x1aa   : > { %s1113_s18 = smov %s1119_s4  ;;  %19 = sbr.rel (!%p17_p4) target bundleno = 8 (0x8), region = 95 }
 0x1b1   :  { %428 = vsyncpa [#allocation4], 1 }
 0x1b2   :  { %430 = vsyncpa [#allocation4 + $0x1], 1 }
 0x1b3   :  { %431 = vsyncpa [#allocation7], 1 }
 0x1b4   :  { %432 = vsyncpa [#allocation5], 1 }
 0x1b5   :  { %434 = vsyncpa [#allocation5 + $0x1], 1 }

</bundles_post_ra>
